<compile_context>
chip_gen: v6e
topology: v6e:2x2x1
jax: 0.10.0
libtpu: 0.0.40
codegen_flags: <defaults>
</compile_context>

<pallas_src>
import jax
import jax.numpy as jnp
from jax.experimental import pallas as pl
from jax.experimental.pallas import tpu as pltpu


def _round_up(x, m):
    return (x + m - 1) // m * m


def _conv_bn_kernel(p_ref, w_ref, b_ref, o_ref):
    # p_ref: (1, K, TM) channel-major patches; w_ref: (Cout, K) BN-folded
    # weight; b_ref: (Cout, 1) f32 bias; o_ref: (1, Cout, TM).
    acc = jnp.dot(w_ref[...], p_ref[0],
                  preferred_element_type=jnp.float32)          # (Cout, TM) f32
    o_ref[0] = (acc + b_ref[...]).astype(o_ref.dtype)


def _pick_spatial_tile(howo, tm_cap):
    """Lane-dense spatial tile: full Ho*Wo, or a multiple of 128 dividing the
    (128-padded) spatial extent."""
    tm_cap = max(128, (tm_cap // 128) * 128)
    if howo <= tm_cap:
        return howo, howo                       # single full-dim tile, no pad
    howo_pad = _round_up(howo, 128)
    for tm in range(tm_cap, 127, -128):
        if howo_pad % tm == 0:
            return tm, howo_pad
    return 128, howo_pad


def downsample_d_forward(x_nchw, conv_w, gamma, beta, running_mean, running_var,
                         eps=1e-5, compute_dtype=None, out_dtype=None,
                         max_tile=2048):
    """x_nchw: (N, Cin, H, W);  conv_w: (Cout, Cin, 2, 2)  (PyTorch layout)."""
    N, Cin, H, W = x_nchw.shape
    Cout = conv_w.shape[0]
    assert H % 2 == 0 and W % 2 == 0
    Ho, Wo = H // 2, W // 2
    howo = Ho * Wo
    K = Cin * 4
    compute_dtype = jnp.dtype(compute_dtype or x_nchw.dtype)
    out_dtype = jnp.dtype(out_dtype or x_nchw.dtype)

    # --- patches, channel-major: (N, K, Ho*Wo), K ordered (ci, kh, kw) ------
    # One materialized XLA rearrangement of x (read + write); kept out of the
    # kernel DMA on purpose (fused gathers would be stride-2 scalar reads).
    patches = x_nchw.reshape(N, Cin, Ho, 2, Wo, 2)
    patches = patches.transpose(0, 1, 3, 5, 2, 4).reshape(N, K, howo)
    patches = patches.astype(compute_dtype)

    # --- fold BN (eval mode): scale into the weight (f32), bias separate ----
    scale = (gamma.astype(jnp.float32)
             / jnp.sqrt(running_var.astype(jnp.float32) + eps))         # (Cout,)
    bias = beta.astype(jnp.float32) - running_mean.astype(jnp.float32) * scale
    w_fold = (conv_w.reshape(Cout, K).astype(jnp.float32)
              * scale[:, None]).astype(compute_dtype)                   # (Cout, K)
    b_col = bias.reshape(Cout, 1)                                        # f32

    # --- spatial tile: lane-dense, VMEM-budgeted, megacore-friendly ---------
    in_b, out_b = compute_dtype.itemsize, out_dtype.itemsize
    vmem_budget = 12 * 1024 * 1024            # per-step tile budget (headroom)
    per_col = 2 * K * in_b + 2 * Cout * out_b    # double-buffered in + out
    tm_cap = min(max_tile, max(128, vmem_budget // max(per_col, 1)))
    tm, howo_pad = _pick_spatial_tile(howo, tm_cap)
    # v7x has 2 TensorCores: prefer >= 2 grid steps when we cheaply can.
    if N * (howo_pad // tm) < 2 and tm % 256 == 0:
        tm //= 2

    if howo_pad != howo:
        patches = jnp.pad(patches, ((0, 0), (0, 0), (0, howo_pad - howo)))

    grid = (N, howo_pad // tm)

    cost = pl.CostEstimate(
        flops=2 * N * howo * K * Cout,
        transcendentals=0,
        bytes_accessed=(patches.size * in_b + w_fold.size * in_b
                        + b_col.size * 4 + N * Cout * howo_pad * out_b))

    out_flat = pl.pallas_call(
        _conv_bn_kernel,
        out_shape=jax.ShapeDtypeStruct((N, Cout, howo_pad), out_dtype),
        grid_spec=pltpu.PrefetchScalarGridSpec(
            num_scalar_prefetch=0,
            grid=grid,
            in_specs=[
                pl.BlockSpec((1, K, tm), lambda n, i: (n, 0, i)),    # patches
                pl.BlockSpec((Cout, K), lambda n, i: (0, 0)),        # resident W
                pl.BlockSpec((Cout, 1), lambda n, i: (0, 0)),        # resident b
            ],
            out_specs=pl.BlockSpec((1, Cout, tm), lambda n, i: (n, 0, i)),
        ),
        compiler_params=pltpu.CompilerParams(
            dimension_semantics=("parallel", "parallel"),
            vmem_limit_bytes=32 * 1024 * 1024,
        ),
        cost_estimate=cost,
    )(patches, w_fold, b_col)

    if howo_pad != howo:
        out_flat = out_flat[:, :, :howo]
    # Free reshape: the kernel already wrote channel-major (NCHW) layout.
    return out_flat.reshape(N, Cout, Ho, Wo)


def reference_forward(x_nchw, conv_w, gamma, beta, running_mean, running_var,
                      eps=1e-5):
    """Pure-JAX reference for correctness check."""
    y = jax.lax.conv_general_dilated(
        x_nchw.astype(jnp.float32), conv_w.astype(jnp.float32),
        window_strides=(2, 2), padding="VALID",
        dimension_numbers=("NCHW", "OIHW", "NCHW"))
    inv = gamma / jnp.sqrt(running_var + eps)
    return y * inv.reshape(1, -1, 1, 1) + (beta - running_mean * inv).reshape(1, -1, 1, 1)


if __name__ == "__main__":
    key = jax.random.PRNGKey(0)
    N, Cin, H, W = 2, 4, 16, 16
    Cout = 8  # nOut

    k1, k2, k3, k4, k5, k6 = jax.random.split(key, 6)
    x = jax.random.normal(k1, (N, Cin, H, W), dtype=jnp.float32)
    conv_w = jax.random.normal(k2, (Cout, Cin, 2, 2), dtype=jnp.float32) * 0.1
    gamma = 1.0 + 0.1 * jax.random.normal(k3, (Cout,), dtype=jnp.float32)
    beta = 0.1 * jax.random.normal(k4, (Cout,), dtype=jnp.float32)
    running_mean = 0.05 * jax.random.normal(k5, (Cout,), dtype=jnp.float32)
    running_var = jnp.abs(1.0 + 0.1 * jax.random.normal(k6, (Cout,), dtype=jnp.float32))

    out = downsample_d_forward(x, conv_w, gamma, beta, running_mean, running_var)
    out = jax.block_until_ready(out)

    ref = reference_forward(x, conv_w, gamma, beta, running_mean, running_var)
    assert out.shape == (N, Cout, H // 2, W // 2), out.shape
    assert jnp.allclose(out, ref, atol=1e-4, rtol=1e-4), \
        float(jnp.max(jnp.abs(out - ref)))

    print("KERNEL_OK")
</pallas_src>

<mosaic_0001>
module attributes {stable_mosaic.version = 11 : i64} {
  func.func @_conv_bn_kernel(%arg0: i32, %arg1: i32, %arg2: memref<1x16x64xf32, #tpu.memory_space<vmem>>, %arg3: memref<8x16xf32, #tpu.memory_space<vmem>>, %arg4: memref<8x1xf32, #tpu.memory_space<vmem>>, %arg5: memref<1x8x64xf32, #tpu.memory_space<vmem>>) attributes {dimension_semantics = [#tpu.dimension_semantics<parallel>, #tpu.dimension_semantics<parallel>], iteration_bounds = array<i64: 2, 1>, scalar_prefetch = 0 : i64, scratch_operands = 0 : i64, tpu.core_type = #tpu.core_type<tc>, window_params = [{transform_indices = @transform_0, window_bounds = array<i64: 1, 16, 64>}, {pipeline_mode = #tpu.pipeline_mode<synchronous>, transform_indices = @transform_1, window_bounds = array<i64: 8, 16>}, {pipeline_mode = #tpu.pipeline_mode<synchronous>, transform_indices = @transform_2, window_bounds = array<i64: 8, 1>}, {transform_indices = @transform_3, window_bounds = array<i64: 1, 8, 64>}]} {
    %c0 = arith.constant 0 : index
    %c0_0 = arith.constant 0 : index
    %0 = vector.load %arg3[%c0, %c0_0] : memref<8x16xf32, #tpu.memory_space<vmem>>, vector<8x16xf32>
    %c0_1 = arith.constant 0 : index
    %c0_2 = arith.constant 0 : index
    %c0_3 = arith.constant 0 : index
    %1 = vector.load %arg2[%c0_1, %c0_2, %c0_3] : memref<1x16x64xf32, #tpu.memory_space<vmem>>, vector<1x16x64xf32>
    %2 = vector.shape_cast %1 : vector<1x16x64xf32> to vector<16x64xf32>
    %cst = arith.constant dense<0.000000e+00> : vector<8x64xf32>
    %3 = tpu.matmul %0, %2, %cst {dimension_numbers = #tpu.dot_dimension_numbers<[1], [0], [0], [1], [0, 0, 1, 1], [], []>} : vector<8x16xf32>, vector<16x64xf32>, vector<8x64xf32> -> vector<8x64xf32>
    %c0_4 = arith.constant 0 : index
    %c0_5 = arith.constant 0 : index
    %4 = vector.load %arg4[%c0_4, %c0_5] : memref<8x1xf32, #tpu.memory_space<vmem>>, vector<8x1xf32>
    %5 = vector.broadcast %4 : vector<8x1xf32> to vector<8x64xf32>
    %6 = arith.addf %3, %5 : vector<8x64xf32>
    %c0_6 = arith.constant 0 : index
    %c0_7 = arith.constant 0 : index
    %c0_8 = arith.constant 0 : index
    %7 = vector.load %arg5[%c0_6, %c0_7, %c0_8] : memref<1x8x64xf32, #tpu.memory_space<vmem>>, vector<1x8x64xf32>
    %8 = vector.shape_cast %7 : vector<1x8x64xf32> to vector<8x64xf32>
    %9 = vector.shape_cast %6 : vector<8x64xf32> to vector<1x8x64xf32>
    tpu.vector_store %arg5[%c0_6, %c0_7, %c0_8], %9 {strides = array<i32>} : memref<1x8x64xf32, #tpu.memory_space<vmem>>, vector<1x8x64xf32>,
    return
  }
  func.func @transform_0(%arg0: i32, %arg1: i32) -> (i32, i32, i32) {
    %c0_i32 = arith.constant 0 : i32
    %c0_i32_0 = arith.constant 0 : i32
    return %arg0, %c0_i32, %arg1 : i32, i32, i32
  }
  func.func @transform_1(%arg0: i32, %arg1: i32) -> (i32, i32) {
    %c0_i32 = arith.constant 0 : i32
    %c0_i32_0 = arith.constant 0 : i32
    %c0_i32_1 = arith.constant 0 : i32
    return %c0_i32, %c0_i32_0 : i32, i32
  }
  func.func @transform_2(%arg0: i32, %arg1: i32) -> (i32, i32) {
    %c0_i32 = arith.constant 0 : i32
    %c0_i32_0 = arith.constant 0 : i32
    %c0_i32_1 = arith.constant 0 : i32
    return %c0_i32, %c0_i32_0 : i32, i32
  }
  func.func @transform_3(%arg0: i32, %arg1: i32) -> (i32, i32, i32) {
    %c0_i32 = arith.constant 0 : i32
    %c0_i32_0 = arith.constant 0 : i32
    return %arg0, %c0_i32, %arg1 : i32, i32, i32
  }
}

</mosaic_0001>

<bundles_post_ra>
// kernel: tpu_custom_call.1
= control target key start
LH: loop header
LB: loop body
LE: loop exit
PB: predicated region body
PF: predicated region fallthrough
CT: control target
= control target key end

     0   :  { %8 = vsyncpa [#allocation3], 0  ;;  %s763_s0 = inlined_call_operand.hbm [shape: f32[2,16,64], index: 0, kind: input, shape index: {}]   ;;  %s764_s1 = inlined_call_operand.vmem [shape: f32[8,16], index: 1, kind: input, shape index: {}]   ;;  %s765_s2 = inlined_call_operand.vmem [shape: f32[8,1], index: 2, kind: input, shape index: {}]   ;;  %s766_s3 = inlined_call_operand.hbm [shape: f32[2,8,64], index: 3, kind: output, shape index: {}]  }
   0x1   :  { %10 = vsyncpa [#allocation3 + $0x1], 0 }
   0x2   :  { %11 = vsyncpa [#allocation4], 0 }
   0x3   :  { %13 = vsyncpa [#allocation4 + $0x1], 0  ;;  %s618_s12 = smov 0   ;;  %s620_s13 = smov 0  }
   0x4   :  { %s622_s14 = smov 0   ;;  %s624_s15 = smov 0  }
   0x5   :  { %s626_s16 = smov 0   ;;  %s628_s17 = smov 0  }
   0x6 LB: > { %s387_s18 = sadd.s32 4294967295, %s589_s17   ;;  %s388_s19 = sadd.s32 4294967294, %s589_s17   ;;  %s589_s17 = sphi %s628_s17, %s19_s17   ;;  %s585_s16 = sphi %s626_s16, %s777_s16   ;;  %s581_s15 = sphi %s624_s15, %s776_s15   ;;  %s577_s14 = sphi %s622_s14, %s775_s14   ;;  %s573_s13 = sphi %s620_s13, %s774_s13   ;;  %s569_s12 = sphi %s618_s12, %s773_s12  }
   0x7   : > { %s31_s20 = sadd.s32 1, %s585_s16  ;;  %s40_s21 = sadd.s32 1, %s577_s14 }
   0x8   : > { %p33_p0 = scmp.ge.s32.totalorder %s31_s20, 2  ;;  %p47_p1 = scmp.ne.s32.totalorder %s577_s14, %s573_s13 }
   0x9   : > { %p48_p2 = scmp.eq.s32.totalorder %s589_s17, 0  ;;  %p53_p3 = scmp.ne.s32.totalorder %s573_s13, %s569_s12 }
   0xa   : > { %s779_s20 = smov (%p33_p0, %s31_s20), 0  ;;  %p54_p5 = scmp.eq.s32.totalorder %s387_s18, 0 }
   0xb   : > { %p659_p4 = por %p48_p2, %p47_p1  ;;  %s35_s23 = ssub.s32 %s585_s16, %s779_s20 }
   0xc   : > { %p121_p6 = scmp.eq.s32.totalorder %s387_s18, 1  ;;  %p38_p7 = scmp.eq.s32.totalorder %s35_s23, 0 }
   0xd   : > { %p665_p8 = por %p54_p5, %p53_p3  ;;  %p127_p10 = scmp.eq.s32.totalorder %s388_s19, 1 }
   0xe   : > { %p669_p9 = por %p121_p6, %p47_p1  ;;  %p425_p13 = scmp.lt.s32.totalorder %s589_s17, 2 }
   0xf   : > { %s674_s26 = scalar_select %p38_p7, %s577_s14, %s40_s21  }
  0x10   : > { %p676_p11 = por %p127_p10, %p53_p3  ;;  %s153_s28 = sand.u32 1, %s577_s14  }
  0x11   : > { %s391_s29 = sshll.u32 %s153_s28, 4  ;;  %s402_s30 = sshll.u32 %s585_s16, 8 }
  0x12   : > { %s164_s6 = scalar_lea.hbm %s763_s0, %s402_s30  ;;  %s157_s7 = scalar_lea.vmem [#allocation2], %s391_s29 }
  0x13   : > { %s165_s8 = sshll.u32 %s157_s7, 4  ;;  %p689_p0 = pnand %p425_p13, %p659_p4  ;;  %s166_s8 = int_to_ptr.vmem [resolvable:$true] %s165_s8 }
  0x14   : > { %p394_p1 = scmp.ge.s32.totalorder %s589_s17, 1  ;;  %s154_s10 = scalar_lea.sflag [#allocation3], %s153_s28 }
  0x15   : > { %p483_p2 = pneg %p689_p0  ;;  %s494_s11 = scalar_lea.vmem %s166_s8, 256 }
  0x16   : > { %p495_p3 = scmp.ne.s32.totalorder %s166_s8, %s494_s11  ;;  %s591_s18 = smov [#allocation2]  }
  0x17   : > { %s499_s19 = sshll.u32 %s591_s18, 4  ;;  %s500_s19 = int_to_ptr.vmem [resolvable:$false] %s499_s19 }
  0x18   : > { %p497_p5 = pnand %p495_p3, %p483_p2  ;;  %s501_s21 = scalar_lea.vmem %s500_s19, 512 }
  0x19   : > { %p502_p7 = scmp.lt.s32.totalorder %s166_s8, %s500_s19  ;;  %p503_p10 = scmp.lt.s32.totalorder %s501_s21, %s494_s11 }
  0x1a   : > { %p498_p6 = pneg %p497_p5 }
  0x1b   : > { %p504_p12 = por %p503_p10, %p502_p7 }
  0x1d   : > { %p505_p4 = pnand %p504_p12, %p498_p6 }
  0x1f   : > { %508 = shalt.err (!%p505_p4)
}
  0x20   : > { %s592_s22 = smov 128   ;;  %s593_s23 = smov 8  }
  0x21   : > { %420 = dma.hbm_to_vmem [thread:$0]  (!%p689_p0), %s164_s6, 256, %s166_s8, %s154_s10, %s592_s22, %s592_s22, %s593_s23  }
  0x22   : > { %p173_p13 = scmp.lt.s32.totalorder %s589_s17, 3 }
  0x24   : > { %p174_p2 = pnand %p394_p1, %p173_p13 }
  0x25   : > { %s702_s28 = sand.u32 (!%p174_p2), 1, %s573_s13  }
  0x26   : > { %177 = sbr.rel (%p174_p2) target bundleno = 257 (0x101), region = 32  ;;  %s395_s29 = sshll.u32 (!%p174_p2), %s702_s28, 4 }
  0x27   : > { %s180_s30 = scalar_lea.sflag (!%p174_p2), [#allocation3], %s702_s28  ;;  %s183_s4 = scalar_lea.vmem (!%p174_p2), [#allocation2], %s395_s29 }
  0x2b   : > { %560 = dma.done.wait (%p665_p8), %s180_s30, 256  }
  0x2c   : > { %562 = vsyncadd (%p665_p8), %s180_s30, 4294967040  ;;  %v594_v0 = vmov 0.0   ;;  %vm595_vm0 = vmmov 0   ;;  %v596_v1 = vmov 0   ;;  %v208_v2 = vld [vmem:[%s183_s4 + $0x8] sm:$0xff]  ;;  %v207_v3 = vld [vmem:[%s183_s4] sm:$0xff] }
  0x2d   : > { %406 = vmatprep.subr.mxu0 %v594_v0  ;;  %410 = vmatprep.mubr.msk.f32.mxu0 %vm595_vm0, %v594_v0  ;;  %v206_v4 = vld [vmem:[%s764_s1] sm:$0xff]  ;;  %vm215_vm1 = vcmask 130048   ;;  %s396_s24 = sshll.u32 %s702_s28, 3  ;;  %s399_s9 = sshll.u32 %s581_s15, 7  ;;  %vm289_vm2 = vcmask 523264  }
  0x2e   : > { %480 = vset.pattern.permute.xlu0 %v596_v1  ;;  %407 = vmatpush3.msra.mxu0 %v208_v2  ;;  %v209_v5 = vld [vmem:[%s765_s2] sm:$0xff]  ;;  %s205_s10 = scalar_lea.vmem [#allocation5], %s396_s24  ;;  %s721_s21 = scalar_lea.hbm %s766_s3, %s399_s9 }
  0x2f   : > { %408 = vmatprep.subr.mxu0 %v594_v0  ;;  %212 = vperm.xlu0 %480, %v209_v5   ;;  %s306_s11 = sshll.u32 %s205_s10, 4  ;;  %s292_s22 = scalar_lea.sflag [#allocation4], %s702_s28  ;;  %s307_s11 = int_to_ptr.vmem [resolvable:$true] %s306_s11 }
  0x30   : > { %409 = vmatpush3.msra.mxu0 %v207_v3  ;;  %s509_s23 = scalar_lea.vmem %s307_s11, 128  ;;  %s597_s15 = smov [#allocation5]  }
  0x31   : > { %411 = vmatmul.mubr.msk.f32.vlgmr.msra.gmra.mxu0 %vm215_vm1, %v206_v4  ;;  %p510_p8 = scmp.ne.s32.totalorder %s307_s11, %s509_s23  ;;  %s513_s29 = sshll.u32 %s597_s15, 4  ;;  %s514_s29 = int_to_ptr.vmem [resolvable:$false] %s513_s29 }
  0x32   : > { %s515_s30 = scalar_lea.vmem %s514_s29, 256  ;;  %p516_p1 = scmp.lt.s32.totalorder %s307_s11, %s514_s29 }
  0x33   : > { %p511_p12 = pnand %p510_p8, %p669_p9  ;;  %p517_p3 = scmp.lt.s32.totalorder %s515_s30, %s509_s23 }
  0x35   : > { %p512_p0 = pneg %p511_p12  ;;  %p518_p5 = por %p517_p3, %p516_p1 }
  0x37   : > { %p519_p6 = pnand %p518_p5, %p512_p0 }
  0xaa   : > { %v213_v6 = vpop.permute.xlu0 %212 }
  0xf1   : > { %v285_v7 = vpop.f32.mrf.mxu0 }
  0xf2   : > { %v286_v8 = vadd.f32 %v285_v7, %v213_v6 }
  0xf3   : > { %v412_v9 = vpop.f32.mrf.mxu0 }
  0xf4   : > { %290 = vst.msk [vmem:[%s205_s10] sm:$0xff] %vm289_vm2, %v286_v8 }
  0xf5   : > { %522 = shalt.err (!%p519_p6)
}
  0xf6   : > { %s523_s4 = scalar_lea.hbm %s721_s21, 128  ;;  %s527_s6 = scalar_lea.hbm %s766_s3, 256 }
  0xf7   : > { %p524_p7 = scmp.ne.s32.totalorder %s721_s21, %s523_s4  ;;  %p528_p13 = scmp.lt.s32.totalorder %s721_s21, %s766_s3 }
  0xf8   : > { %p529_p2 = scmp.lt.s32.totalorder %s527_s6, %s523_s4 }
  0xf9   : > { %p525_p10 = pnand %p524_p7, %p669_p9 }
  0xfa   : > { %p530_p8 = por %p529_p2, %p528_p13 }
  0xfb   : > { %p526_p4 = pneg %p525_p10 }
  0xfd   : > { %p531_p12 = pnand %p530_p8, %p526_p4 }
  0xff   : > { %534 = shalt.err (!%p531_p12)
}
 0x100   : > { %415 = dma.vmem_to_hbm [thread:$0]  (%p669_p9), %s307_s11, 128, %s721_s21, %s292_s22  }
 0x101 PF: > { %s318_s24 = sand.u32 1, %s569_s12   ;;  %p772_p0 = scmp.ge.s32.totalorder %s589_s17, 2 }
 0x102   : > { %s319_s9 = scalar_lea.sflag [#allocation4], %s318_s24 }
 0x103   : > { %p422_p1 = pnand %p772_p0, %p676_p11 }
 0x105   : > { %p423_p3 = pneg %p422_p1 }
 0x107   : > { %564 = dma.done.wait (%p423_p3), %s319_s9, 128  }
 0x108   : > { %566 = vsyncadd (%p423_p3), %s319_s9, 4294967168  ;;  %s19_s17 = sadd.s32 1, %s589_s17   ;;  %s773_s12 = smov %s573_s13 }
 0x109   : > { %p16_p5 = scmp.ge.s32.totalorder %s19_s17, 4   ;;  %s774_s13 = smov %s577_s14 }
 0x10a   : > { %s775_s14 = smov %s674_s26  ;;  %s776_s15 = smov %s585_s16 }
 0x10b   : > { %s777_s16 = smov %s779_s20  ;;  %18 = sbr.rel (!%p16_p5) target bundleno = 6 (0x6), region = 77 }
 0x110   :  { %324 = vsyncpa [#allocation3], 1 }
 0x111   :  { %326 = vsyncpa [#allocation3 + $0x1], 1 }
 0x112   :  { %327 = vsyncpa [#allocation4], 1 }
 0x113   :  { %329 = vsyncpa [#allocation4 + $0x1], 1 }

</bundles_post_ra>
